<compile_context>
chip_gen: v7x
topology: tpu7x:2x2x1
jax: 0.10.0
libtpu: 0.0.40
codegen_flags: <defaults>
</compile_context>

<pallas_src>
import functools
import math

import jax
import jax.numpy as jnp
from jax.experimental import pallas as pl
from jax.experimental.pallas import tpu as pltpu

EPS = 1e-5


def _sublane(itemsize):
    # rows-per-vreg packing: f32 -> 8, bf16 -> 16, int8/fp8 -> 32
    return {4: 8, 2: 16, 1: 32}.get(itemsize, 8)


@functools.lru_cache(maxsize=1)
def _tpu_budget():
    """(vmem_limit_bytes, num_tensorcores) for the local TPU generation."""
    vmem_cap = 64 * 1024 * 1024       # conservative default: v7x per-TC VMEM
    num_tc = 1
    try:
        info = pltpu.get_tpu_info()
        cap = getattr(info, "vmem_capacity_bytes", None)
        if isinstance(cap, int) and cap > 0:
            vmem_cap = cap
        for attr in ("tensorcores_per_chip", "num_tensorcores", "num_cores",
                     "cores_per_chip"):
            v = getattr(info, attr, None)
            if isinstance(v, int) and v > 0:
                num_tc = v
                break
    except Exception:
        pass
    # ~70% of physical VMEM: 128 MiB parts (v5e/v6e) -> ~90 MiB scoped limit,
    # 64 MiB parts (v7x) -> ~45 MiB.
    return int(vmem_cap * 0.70), num_tc


# ---------------------------------------------------------------------------
# Fused ProcessingLayer kernel: LN1 -> dense1 -> dense2 + residual -> LN2.
# ---------------------------------------------------------------------------
def _make_fused_kernel(has_ln_bias, inv_e):
    def kernel(*refs):
        refs = list(refs)
        x_ref = refs.pop(0)
        w1_ref = refs.pop(0)
        b1_ref = refs.pop(0)
        w2_ref = refs.pop(0)
        b2_ref = refs.pop(0)
        ln1w_ref = refs.pop(0)
        ln2w_ref = refs.pop(0)
        ln1b_ref = refs.pop(0) if has_ln_bias else None
        ln2b_ref = refs.pop(0) if has_ln_bias else None
        o_ref = refs.pop(0)
        xin_ref = refs.pop(0)     # (tm, E) activation-dtype scratch: LN1 output
        acc_ref = refs.pop(0)     # (tm, E) f32 scratch: y accumulator

        j = pl.program_id(1)

        @pl.when(j == 0)
        def _():
            # LayerNorm1 on the raw x row tile; keep x_in resident in VMEM.
            x = x_ref[...].astype(jnp.float32)
            mean = jnp.sum(x, axis=-1, keepdims=True) * inv_e
            c = x - mean
            var = jnp.sum(c * c, axis=-1, keepdims=True) * inv_e
            xin = c * jax.lax.rsqrt(var + EPS) * ln1w_ref[...].astype(jnp.float32)
            if has_ln_bias:
                xin = xin + ln1b_ref[...].astype(jnp.float32)
            xin_ref[...] = xin.astype(xin_ref.dtype)
            acc_ref[...] = jnp.zeros_like(acc_ref)

        # h_j = x_in @ W1[:, panel j] + b1[panel j]     (tm, ti), f32 accumulate
        h = jnp.dot(xin_ref[...], w1_ref[...], preferred_element_type=jnp.float32)
        h = h + b1_ref[...].astype(jnp.float32)
        # y_acc += h_j @ W2[panel j, :]
        acc_ref[...] += jnp.dot(h.astype(xin_ref.dtype), w2_ref[...],
                                preferred_element_type=jnp.float32)

        @pl.when(j == pl.num_programs(1) - 1)
        def _():
            # denselayer2(h) + x_in, then LayerNorm2, all in the epilogue.
            y = acc_ref[...] + b2_ref[...].astype(jnp.float32) \
                + xin_ref[...].astype(jnp.float32)
            mean = jnp.sum(y, axis=-1, keepdims=True) * inv_e
            c = y - mean
            var = jnp.sum(c * c, axis=-1, keepdims=True) * inv_e
            out = c * jax.lax.rsqrt(var + EPS) * ln2w_ref[...].astype(jnp.float32)
            if has_ln_bias:
                out = out + ln2b_ref[...].astype(jnp.float32)
            o_ref[...] = out.astype(o_ref.dtype)

    return kernel


def _fused_vmem_bytes(tm, ti, E, itemsize):
    # Double-buffered streamed blocks + f32 scratch + the (tm, ti) h intermediate.
    io = 2 * itemsize * (tm * E        # x row tile
                         + E * ti      # W1 column panel
                         + ti * E      # W2 row panel
                         + tm * E)     # output tile
    vecs = 2 * itemsize * (ti + 5 * E)            # b1, b2, ln weights/biases
    scratch = 4 * (2 * tm * E + tm * ti)          # x_in + y acc + h intermediate
    return io + vecs + scratch


def _fused_tiles(M, E, I, itemsize, vmem_budget):
    """Pick (row tile tm, inner panel ti) for the fused kernel, or None."""
    sub = _sublane(itemsize)
    budget = int(vmem_budget * 0.8)   # headroom for compiler temporaries

    # ti is the lane axis of the W1 panel / h tile and the contraction axis of
    # the second matmul: multiple of 128 that divides I exactly, or I itself.
    hi = (min(I, 1024) // 128) * 128
    ti_cands = [t for t in range(hi, 127, -128) if I % t == 0]
    if not ti_cands:
        ti_cands = [I]   # ragged inner dim: single full-extent panel

    tm_cands = []
    if M <= 1024:
        tm_cands.append(M)
    for t in (1024, 512, 256, 128, 64, 32, 16):
        if t < M:
            tt = (t // sub) * sub
            if tt >= sub and tt not in tm_cands:
                tm_cands.append(tt)
    if sub < M and sub not in tm_cands:
        tm_cands.append(sub)
    if not tm_cands:
        tm_cands = [M]

    for tm in tm_cands:          # largest rows first: minimizes W re-streaming
        for ti in ti_cands:      # then largest inner panel: MXU occupancy
            if _fused_vmem_bytes(tm, ti, E, itemsize) <= budget:
                return tm, ti
    return None


def processing_layer(x, p):
    """Fused forward of ProcessingLayer.  Falls back to the modular path if the
    fused tiles cannot fit the per-generation VMEM budget."""
    E = x.shape[-1]
    I = p["W1"].shape[1]
    orig_shape = x.shape
    M = math.prod(orig_shape[:-1])
    itemsize = jnp.dtype(x.dtype).itemsize
    vmem_budget, _ = _tpu_budget()

    tiles = _fused_tiles(M, E, I, itemsize, vmem_budget)
    if tiles is None:
        return _modular_processing_layer(x, p)
    tm, ti = tiles

    has_ln_bias = p["ln1_b"] is not None
    x2 = x.reshape(M, E)

    operands = [x2, p["W1"], p["b1"].reshape(1, I), p["W2"],
                p["b2"].reshape(1, E),
                p["ln1_w"].reshape(1, E), p["ln2_w"].reshape(1, E)]
    in_specs = [
        pl.BlockSpec((tm, E), lambda i, j: (i, 0)),    # x (resident across j)
        pl.BlockSpec((E, ti), lambda i, j: (0, j)),    # W1 column panel
        pl.BlockSpec((1, ti), lambda i, j: (0, j)),    # b1 panel
        pl.BlockSpec((ti, E), lambda i, j: (j, 0)),    # W2 row panel
        pl.BlockSpec((1, E), lambda i, j: (0, 0)),     # b2
        pl.BlockSpec((1, E), lambda i, j: (0, 0)),     # ln1 weight
        pl.BlockSpec((1, E), lambda i, j: (0, 0)),     # ln2 weight
    ]
    if has_ln_bias:
        operands += [p["ln1_b"].reshape(1, E), p["ln2_b"].reshape(1, E)]
        in_specs += [pl.BlockSpec((1, E), lambda i, j: (0, 0))] * 2

    grid = (pl.cdiv(M, tm), I // ti)
    n_row_tiles = grid[0]
    flops = 4 * M * E * I + 18 * M * E
    bytes_accessed = (2 * M * E + n_row_tiles * (2 * E * I + I) + 6 * E) * itemsize

    out = pl.pallas_call(
        _make_fused_kernel(has_ln_bias, 1.0 / E),
        out_shape=jax.ShapeDtypeStruct((M, E), x.dtype),
        grid_spec=pltpu.PrefetchScalarGridSpec(
            num_scalar_prefetch=0,
            grid=grid,
            in_specs=in_specs,
            out_specs=pl.BlockSpec((tm, E), lambda i, j: (i, 0)),
            scratch_shapes=[pltpu.VMEM((tm, E), x.dtype),       # x_in
                            pltpu.VMEM((tm, E), jnp.float32)],  # y accumulator
        ),
        compiler_params=pltpu.CompilerParams(
            dimension_semantics=("parallel", "arbitrary"),
            vmem_limit_bytes=vmem_budget,
        ),
        cost_estimate=pl.CostEstimate(
            flops=flops, transcendentals=2 * M, bytes_accessed=bytes_accessed),
    )(*operands)
    return out.reshape(orig_shape)


# ---------------------------------------------------------------------------
# Modular fallback path: LayerNorm kernel (optionally fused residual, optional
# bias) and a tiled matmul kernel.
# ---------------------------------------------------------------------------
def _make_ln_kernel(has_residual, has_bias, inv_h):
    def kernel(*refs):
        refs = list(refs)
        x_ref = refs.pop(0)
        r_ref = refs.pop(0) if has_residual else None
        w_ref = refs.pop(0)
        b_ref = refs.pop(0) if has_bias else None
        o_ref = refs.pop(0)

        x = x_ref[...].astype(jnp.float32)
        if has_residual:
            x = x + r_ref[...].astype(jnp.float32)
        mean = jnp.sum(x, axis=-1, keepdims=True) * inv_h
        centered = x - mean
        var = jnp.sum(centered * centered, axis=-1, keepdims=True) * inv_h
        y = centered * jax.lax.rsqrt(var + EPS) * w_ref[...].astype(jnp.float32)
        if has_bias:
            y = y + b_ref[...].astype(jnp.float32)
        o_ref[...] = y.astype(o_ref.dtype)

    return kernel


def _ln_row_tile(rows, hidden, itemsize, n_streams, vmem_budget, num_tc):
    sub = _sublane(itemsize)
    if rows <= sub:
        return rows
    row_bytes = max(1, hidden * itemsize)
    # ~4 MiB per streamed block amortizes the ~0.35us/grid-step overhead even at
    # v7x HBM bandwidth, while keeping all double-buffered streams in budget.
    per_block = min(4 * 1024 * 1024, vmem_budget // max(1, 2 * n_streams))
    tile = max(sub, (per_block // row_bytes) // sub * sub)
    tile = min(tile, 2048)
    if rows <= tile:
        return rows
    if num_tc > 1:
        # Keep >= 2*num_tc grid steps so the "parallel" row axis shards across
        # all TensorCores (v7x megacore); single-TC parts keep the full tile.
        split = -(-rows // (2 * num_tc))
        split = max(sub, -(-split // sub) * sub)
        tile = min(tile, split)
    return max(sub, (tile // sub) * sub)


def layer_norm(x, weight, bias=None, residual=None):
    """out = F.layer_norm(x [+ residual], (H,), weight, bias, eps=1e-5)."""
    hidden = x.shape[-1]
    orig_shape = x.shape
    rows = math.prod(orig_shape[:-1])
    itemsize = jnp.dtype(x.dtype).itemsize
    vmem_budget, num_tc = _tpu_budget()
    n_streams = 2 + (1 if residual is not None else 0)
    row_tile = _ln_row_tile(rows, hidden, itemsize, n_streams, vmem_budget, num_tc)
    grid = (pl.cdiv(rows, row_tile),)   # ragged last block is store-masked

    row_spec = pl.BlockSpec((row_tile, hidden), lambda i: (i, 0))
    par_spec = pl.BlockSpec((1, hidden), lambda i: (0, 0))

    operands = [x.reshape(rows, hidden)]
    in_specs = [row_spec]
    bytes_accessed = 2 * rows * hidden * itemsize
    if residual is not None:
        operands.append(residual.reshape(rows, hidden))
        in_specs.append(row_spec)
        bytes_accessed += rows * hidden * itemsize
    operands.append(weight.reshape(1, hidden))
    in_specs.append(par_spec)
    if bias is not None:
        operands.append(bias.reshape(1, hidden))
        in_specs.append(par_spec)

    kernel = _make_ln_kernel(residual is not None, bias is not None, 1.0 / hidden)

    out = pl.pallas_call(
        kernel,
        out_shape=jax.ShapeDtypeStruct((rows, hidden), x.dtype),
        grid_spec=pltpu.PrefetchScalarGridSpec(
            num_scalar_prefetch=0,
            grid=grid,
            in_specs=in_specs,
            out_specs=row_spec,
        ),
        compiler_params=pltpu.CompilerParams(
            dimension_semantics=("parallel",),
            vmem_limit_bytes=vmem_budget,
        ),
        cost_estimate=pl.CostEstimate(
            flops=9 * rows * hidden, transcendentals=rows,
            bytes_accessed=bytes_accessed),
    )(*operands)
    return out.reshape(orig_shape)


def _linear_kernel(x_ref, w_ref, b_ref, o_ref, acc_ref):
    k = pl.program_id(2)

    @pl.when(k == 0)
    def _():
        acc_ref[...] = jnp.zeros_like(acc_ref)

    acc_ref[...] += jnp.dot(x_ref[...], w_ref[...],
                            preferred_element_type=jnp.float32)

    @pl.when(k == pl.num_programs(2) - 1)
    def _():
        o_ref[...] = (acc_ref[...] + b_ref[...].astype(jnp.float32)).astype(o_ref.dtype)


def _matmul_tiles(M, K, N, itemsize, vmem_budget):
    sub = _sublane(itemsize)
    budget = int(vmem_budget * 0.8)

    # Contraction tile must divide K exactly (a ragged, store-masked block is
    # fine on non-reduction axes but would feed garbage into the accumulator).
    tk = K
    if K > 1024:
        for cand in range(1024, 127, -128):
            if K % cand == 0:
                tk = cand
                break
    # TODO(synk): a huge ragged K (no multiple-of-128 divisor) keeps tk == K;
    # pad K with zero columns upstream if that ever exceeds the VMEM budget.

    def row_tile(t):
        return M if t >= M else max(sub, (t // sub) * sub)

    def col_tile(t):
        return N if t >= N else max(128, (t // 128) * 128)

    def fits(tm, tn):
        blocks = 2 * itemsize * (tm * tk + tk * tn + tn + tm * tn)
        acc = 4 * tm * tn
        return blocks + 2 * acc <= budget

    # Prefer 512-class tiles (1024 rows for very tall M): ~2x the arithmetic
    # intensity of 256x256 and half the HBM weight re-streaming.
    tm_prefs = ([1024] if M >= 4096 else []) + [512, 256, 128, 64, sub]
    tn_prefs = [512, 256, 128]
    for tm_raw in tm_prefs:
        for tn_raw in tn_prefs:
            tm, tn = row_tile(tm_raw), col_tile(tn_raw)
            if fits(tm, tn):
                return tm, tk, tn
    return row_tile(sub), tk, col_tile(128)


def linear(x, w, b):
    """x: (..., K), w: (K, N) == torch Linear weight.T, b: (N,)."""
    K, N = w.shape
    orig_shape = x.shape
    assert orig_shape[-1] == K
    M = math.prod(orig_shape[:-1])
    x2 = x.reshape(M, K)
    b2 = b.reshape(1, N)
    itemsize = jnp.dtype(x.dtype).itemsize
    vmem_budget, _ = _tpu_budget()

    tm, tk, tn = _matmul_tiles(M, K, N, itemsize, vmem_budget)
    grid = (pl.cdiv(M, tm), pl.cdiv(N, tn), K // tk)

    out = pl.pallas_call(
        _linear_kernel,
        out_shape=jax.ShapeDtypeStruct((M, N), x.dtype),
        grid_spec=pltpu.PrefetchScalarGridSpec(
            num_scalar_prefetch=0,
            grid=grid,
            in_specs=[
                pl.BlockSpec((tm, tk), lambda i, j, k: (i, k)),
                pl.BlockSpec((tk, tn), lambda i, j, k: (k, j)),
                pl.BlockSpec((1, tn), lambda i, j, k: (0, j)),
            ],
            out_specs=pl.BlockSpec((tm, tn), lambda i, j, k: (i, j)),
            scratch_shapes=[pltpu.VMEM((tm, tn), jnp.float32)],
        ),
        compiler_params=pltpu.CompilerParams(
            dimension_semantics=("parallel", "parallel", "arbitrary"),
            vmem_limit_bytes=vmem_budget,
        ),
        cost_estimate=pl.CostEstimate(
            flops=2 * M * N * K, transcendentals=0,
            bytes_accessed=(M * K + K * N + M * N + N) * itemsize),
    )(x2, w, b2)
    return out.reshape(orig_shape[:-1] + (N,))


def _modular_processing_layer(x, p):
    x_in = layer_norm(x, p["ln1_w"], p["ln1_b"])
    h = linear(x_in, p["W1"], p["b1"])
    y = linear(h, p["W2"], p["b2"])
    # residual add fused into the second layernorm kernel
    return layer_norm(y, p["ln2_w"], p["ln2_b"], residual=x_in)


# ---------------------------------------------------------------------------
# Params + pure-JAX reference.
# ---------------------------------------------------------------------------
def init_processing_layer_params(key, dim_embedding, dim_inner, bias=True,
                                 dtype=jnp.float32):
    ks = jax.random.split(key, 8)
    return {
        "ln1_w": 1.0 + 0.1 * jax.random.normal(ks[0], (dim_embedding,), dtype),
        "ln1_b": 0.1 * jax.random.normal(ks[1], (dim_embedding,), dtype) if bias else None,
        "W1": 0.05 * jax.random.normal(ks[2], (dim_embedding, dim_inner), dtype),
        "b1": 0.05 * jax.random.normal(ks[3], (dim_inner,), dtype),
        "W2": 0.05 * jax.random.normal(ks[4], (dim_inner, dim_embedding), dtype),
        "b2": 0.05 * jax.random.normal(ks[5], (dim_embedding,), dtype),
        "ln2_w": 1.0 + 0.1 * jax.random.normal(ks[6], (dim_embedding,), dtype),
        "ln2_b": 0.1 * jax.random.normal(ks[7], (dim_embedding,), dtype) if bias else None,
    }


def _reference_layer_norm(x, w, b, residual=None):
    x32 = x.astype(jnp.float32)
    if residual is not None:
        x32 = x32 + residual.astype(jnp.float32)
    mean = jnp.mean(x32, axis=-1, keepdims=True)
    var = jnp.mean((x32 - mean) ** 2, axis=-1, keepdims=True)
    out = (x32 - mean) / jnp.sqrt(var + EPS) * w
    if b is not None:
        out = out + b
    return out.astype(x.dtype)


def _reference_processing_layer(x, p):
    x_in = _reference_layer_norm(x, p["ln1_w"], p["ln1_b"])
    h = x_in @ p["W1"] + p["b1"]
    y = h @ p["W2"] + p["b2"]
    return _reference_layer_norm(y, p["ln2_w"], p["ln2_b"], residual=x_in)


if __name__ == "__main__":
    key = jax.random.PRNGKey(0)

    # --- small config consistent with the module ---------------------------
    batch, seq = 2, 8
    dim_embedding, dim_inner = 128, 512
    kx, kp = jax.random.split(key)
    x = jax.random.normal(kx, (batch, seq, dim_embedding), dtype=jnp.float32)
    params = init_processing_layer_params(kp, dim_embedding, dim_inner, bias=True)

    out = jax.block_until_ready(processing_layer(x, params))
    ref = _reference_processing_layer(x, params)
    assert out.shape == x.shape and out.dtype == x.dtype
    # MXU default f32 precision (bf16-class multiplies) -> loose matmul tolerance
    assert jnp.allclose(out, ref, atol=2e-2, rtol=2e-2), \
        float(jnp.max(jnp.abs(out - ref)))

    # bias=False layernorm config of the module
    params_nb = init_processing_layer_params(kp, dim_embedding, dim_inner, bias=False)
    out_nb = jax.block_until_ready(processing_layer(x, params_nb))
    ref_nb = _reference_processing_layer(x, params_nb)
    assert jnp.allclose(out_nb, ref_nb, atol=2e-2, rtol=2e-2)

    # modular (unfused) fallback path + tight standalone LN checks (no matmul)
    out_mod = jax.block_until_ready(_modular_processing_layer(x, params))
    assert jnp.allclose(out_mod, ref, atol=2e-2, rtol=2e-2)
    ln_out = jax.block_until_ready(layer_norm(x, params["ln1_w"], params["ln1_b"]))
    assert jnp.allclose(
        ln_out, _reference_layer_norm(x, params["ln1_w"], params["ln1_b"]),
        atol=1e-5, rtol=1e-5)
    ln_nb = jax.block_until_ready(layer_norm(x, params["ln1_w"], None))
    assert jnp.allclose(
        ln_nb, _reference_layer_norm(x, params["ln1_w"], None),
        atol=1e-5, rtol=1e-5)

    # --- larger shape: exercises multi-step inner accumulation (j loop) and a
    # ragged final row tile (store masking) in the fused kernel ---------------
    b2_, s2_, E2, I2 = 2, 520, 256, 2048
    x_big = jax.random.normal(jax.random.PRNGKey(1), (b2_, s2_, E2), dtype=jnp.float32)
    p_big = init_processing_layer_params(jax.random.PRNGKey(2), E2, I2, bias=True)
    out_big = jax.block_until_ready(processing_layer(x_big, p_big))
    ref_big = _reference_processing_layer(x_big, p_big)
    assert jnp.allclose(out_big, ref_big, atol=5e-2, rtol=5e-2), \
        float(jnp.max(jnp.abs(out_big - ref_big)))

    print("KERNEL_OK")
</pallas_src>

<mosaic_0001>
module attributes {stable_mosaic.version = 11 : i64} {
  func.func @kernel(%arg0: i32, %arg1: i32, %arg2: memref<16x128xf32, #tpu.memory_space<vmem>>, %arg3: memref<128x512xf32, #tpu.memory_space<vmem>>, %arg4: memref<1x512xf32, #tpu.memory_space<vmem>>, %arg5: memref<512x128xf32, #tpu.memory_space<vmem>>, %arg6: memref<1x128xf32, #tpu.memory_space<vmem>>, %arg7: memref<1x128xf32, #tpu.memory_space<vmem>>, %arg8: memref<1x128xf32, #tpu.memory_space<vmem>>, %arg9: memref<1x128xf32, #tpu.memory_space<vmem>>, %arg10: memref<1x128xf32, #tpu.memory_space<vmem>>, %arg11: memref<16x128xf32, #tpu.memory_space<vmem>>, %arg12: memref<16x128xf32, #tpu.memory_space<vmem>>, %arg13: memref<16x128xf32, #tpu.memory_space<vmem>>) attributes {dimension_semantics = [#tpu.dimension_semantics<parallel>, #tpu.dimension_semantics<arbitrary>], iteration_bounds = array<i64: 1, 1>, scalar_prefetch = 0 : i64, scratch_operands = 2 : i64, tpu.core_type = #tpu.core_type<tc>, window_params = [{transform_indices = @transform_0, window_bounds = array<i64: 16, 128>}, {transform_indices = @transform_1, window_bounds = array<i64: 128, 512>}, {transform_indices = @transform_2, window_bounds = array<i64: 1, 512>}, {transform_indices = @transform_3, window_bounds = array<i64: 512, 128>}, {pipeline_mode = #tpu.pipeline_mode<synchronous>, transform_indices = @transform_4, window_bounds = array<i64: 1, 128>}, {pipeline_mode = #tpu.pipeline_mode<synchronous>, transform_indices = @transform_5, window_bounds = array<i64: 1, 128>}, {pipeline_mode = #tpu.pipeline_mode<synchronous>, transform_indices = @transform_6, window_bounds = array<i64: 1, 128>}, {pipeline_mode = #tpu.pipeline_mode<synchronous>, transform_indices = @transform_7, window_bounds = array<i64: 1, 128>}, {pipeline_mode = #tpu.pipeline_mode<synchronous>, transform_indices = @transform_8, window_bounds = array<i64: 1, 128>}, {transform_indices = @transform_9, window_bounds = array<i64: 16, 128>}]} {
    %c0_i32 = arith.constant 0 : i32
    %0 = arith.cmpi eq, %arg1, %c0_i32 : i32
    %1 = arith.extui %0 : i1 to i32
    %c0_i32_0 = arith.constant 0 : i32
    %2 = arith.cmpi ne, %1, %c0_i32_0 : i32
    scf.if %2 {
      %c0_15 = arith.constant 0 : index
      %c0_16 = arith.constant 0 : index
      %17 = vector.load %arg2[%c0_15, %c0_16] : memref<16x128xf32, #tpu.memory_space<vmem>>, vector<16x128xf32>
      %cst_17 = arith.constant dense<0.000000e+00> : vector<16xf32>
      %18 = vector.multi_reduction <add>, %17, %cst_17 [1] : vector<16x128xf32> to vector<16xf32>
      %19 = vector.shape_cast %18 : vector<16xf32> to vector<16x1xf32>
      %cst_18 = arith.constant 7.812500e-03 : f32
      %20 = vector.broadcast %cst_18 : f32 to vector<16x1xf32>
      %21 = arith.mulf %19, %20 : vector<16x1xf32>
      %22 = vector.broadcast %21 : vector<16x1xf32> to vector<16x128xf32>
      %23 = arith.subf %17, %22 : vector<16x128xf32>
      %24 = arith.mulf %23, %23 : vector<16x128xf32>
      %cst_19 = arith.constant dense<0.000000e+00> : vector<16xf32>
      %25 = vector.multi_reduction <add>, %24, %cst_19 [1] : vector<16x128xf32> to vector<16xf32>
      %26 = vector.shape_cast %25 : vector<16xf32> to vector<16x1xf32>
      %cst_20 = arith.constant 7.812500e-03 : f32
      %27 = vector.broadcast %cst_20 : f32 to vector<16x1xf32>
      %28 = arith.mulf %26, %27 : vector<16x1xf32>
      %cst_21 = arith.constant 9.99999974E-6 : f32
      %29 = vector.broadcast %cst_21 : f32 to vector<16x1xf32>
      %30 = arith.addf %28, %29 : vector<16x1xf32>
      %31 = math.rsqrt %30 : vector<16x1xf32>
      %32 = vector.broadcast %31 : vector<16x1xf32> to vector<16x128xf32>
      %33 = arith.mulf %23, %32 : vector<16x128xf32>
      %c0_22 = arith.constant 0 : index
      %c0_23 = arith.constant 0 : index
      %34 = vector.load %arg7[%c0_22, %c0_23] : memref<1x128xf32, #tpu.memory_space<vmem>>, vector<1x128xf32>
      %35 = vector.broadcast %34 : vector<1x128xf32> to vector<16x128xf32>
      %36 = arith.mulf %33, %35 : vector<16x128xf32>
      %c0_24 = arith.constant 0 : index
      %c0_25 = arith.constant 0 : index
      %37 = vector.load %arg9[%c0_24, %c0_25] : memref<1x128xf32, #tpu.memory_space<vmem>>, vector<1x128xf32>
      %38 = vector.broadcast %37 : vector<1x128xf32> to vector<16x128xf32>
      %39 = arith.addf %36, %38 : vector<16x128xf32>
      %c0_26 = arith.constant 0 : index
      %c0_27 = arith.constant 0 : index
      %40 = vector.load %arg12[%c0_26, %c0_27] : memref<16x128xf32, #tpu.memory_space<vmem>>, vector<16x128xf32>
      tpu.vector_store %arg12[%c0_26, %c0_27], %39 {strides = array<i32>} : memref<16x128xf32, #tpu.memory_space<vmem>>, vector<16x128xf32>,
      %cst_28 = arith.constant 0.000000e+00 : f32
      %41 = vector.broadcast %cst_28 : f32 to vector<16x128xf32>
      %c0_29 = arith.constant 0 : index
      %c0_30 = arith.constant 0 : index
      %42 = vector.load %arg13[%c0_29, %c0_30] : memref<16x128xf32, #tpu.memory_space<vmem>>, vector<16x128xf32>
      tpu.vector_store %arg13[%c0_29, %c0_30], %41 {strides = array<i32>} : memref<16x128xf32, #tpu.memory_space<vmem>>, vector<16x128xf32>,
    } else {
    }
    %c0 = arith.constant 0 : index
    %c0_1 = arith.constant 0 : index
    %3 = vector.load %arg12[%c0, %c0_1] : memref<16x128xf32, #tpu.memory_space<vmem>>, vector<16x128xf32>
    %c0_2 = arith.constant 0 : index
    %c0_3 = arith.constant 0 : index
    %4 = vector.load %arg3[%c0_2, %c0_3] : memref<128x512xf32, #tpu.memory_space<vmem>>, vector<128x512xf32>
    %cst = arith.constant dense<0.000000e+00> : vector<16x512xf32>
    %5 = tpu.matmul %3, %4, %cst {dimension_numbers = #tpu.dot_dimension_numbers<[1], [0], [0], [1], [0, 0, 1, 1], [], []>} : vector<16x128xf32>, vector<128x512xf32>, vector<16x512xf32> -> vector<16x512xf32>
    %c0_4 = arith.constant 0 : index
    %c0_5 = arith.constant 0 : index
    %6 = vector.load %arg4[%c0_4, %c0_5] : memref<1x512xf32, #tpu.memory_space<vmem>>, vector<1x512xf32>
    %7 = vector.broadcast %6 : vector<1x512xf32> to vector<16x512xf32>
    %8 = arith.addf %5, %7 : vector<16x512xf32>
    %c0_6 = arith.constant 0 : index
    %c0_7 = arith.constant 0 : index
    %9 = vector.load %arg13[%c0_6, %c0_7] : memref<16x128xf32, #tpu.memory_space<vmem>>, vector<16x128xf32>
    %c0_8 = arith.constant 0 : index
    %c0_9 = arith.constant 0 : index
    %10 = vector.load %arg5[%c0_8, %c0_9] : memref<512x128xf32, #tpu.memory_space<vmem>>, vector<512x128xf32>
    %cst_10 = arith.constant dense<0.000000e+00> : vector<16x128xf32>
    %11 = tpu.matmul %8, %10, %cst_10 {dimension_numbers = #tpu.dot_dimension_numbers<[1], [0], [0], [1], [0, 0, 1, 1], [], []>} : vector<16x512xf32>, vector<512x128xf32>, vector<16x128xf32> -> vector<16x128xf32>
    %12 = arith.addf %9, %11 : vector<16x128xf32>
    %c0_11 = arith.constant 0 : index
    %c0_12 = arith.constant 0 : index
    %13 = vector.load %arg13[%c0_11, %c0_12] : memref<16x128xf32, #tpu.memory_space<vmem>>, vector<16x128xf32>
    tpu.vector_store %arg13[%c0_11, %c0_12], %12 {strides = array<i32>} : memref<16x128xf32, #tpu.memory_space<vmem>>, vector<16x128xf32>,
    %c0_i32_13 = arith.constant 0 : i32
    %14 = arith.cmpi eq, %arg1, %c0_i32_13 : i32
    %15 = arith.extui %14 : i1 to i32
    %c0_i32_14 = arith.constant 0 : i32
    %16 = arith.cmpi ne, %15, %c0_i32_14 : i32
    scf.if %16 {
      %c0_15 = arith.constant 0 : index
      %c0_16 = arith.constant 0 : index
      %17 = vector.load %arg13[%c0_15, %c0_16] : memref<16x128xf32, #tpu.memory_space<vmem>>, vector<16x128xf32>
      %c0_17 = arith.constant 0 : index
      %c0_18 = arith.constant 0 : index
      %18 = vector.load %arg6[%c0_17, %c0_18] : memref<1x128xf32, #tpu.memory_space<vmem>>, vector<1x128xf32>
      %19 = vector.broadcast %18 : vector<1x128xf32> to vector<16x128xf32>
      %20 = arith.addf %17, %19 : vector<16x128xf32>
      %c0_19 = arith.constant 0 : index
      %c0_20 = arith.constant 0 : index
      %21 = vector.load %arg12[%c0_19, %c0_20] : memref<16x128xf32, #tpu.memory_space<vmem>>, vector<16x128xf32>
      %22 = arith.addf %20, %21 : vector<16x128xf32>
      %cst_21 = arith.constant dense<0.000000e+00> : vector<16xf32>
      %23 = vector.multi_reduction <add>, %22, %cst_21 [1] : vector<16x128xf32> to vector<16xf32>
      %24 = vector.shape_cast %23 : vector<16xf32> to vector<16x1xf32>
      %cst_22 = arith.constant 7.812500e-03 : f32
      %25 = vector.broadcast %cst_22 : f32 to vector<16x1xf32>
      %26 = arith.mulf %24, %25 : vector<16x1xf32>
      %27 = vector.broadcast %26 : vector<16x1xf32> to vector<16x128xf32>
      %28 = arith.subf %22, %27 : vector<16x128xf32>
      %29 = arith.mulf %28, %28 : vector<16x128xf32>
      %cst_23 = arith.constant dense<0.000000e+00> : vector<16xf32>
      %30 = vector.multi_reduction <add>, %29, %cst_23 [1] : vector<16x128xf32> to vector<16xf32>
      %31 = vector.shape_cast %30 : vector<16xf32> to vector<16x1xf32>
      %cst_24 = arith.constant 7.812500e-03 : f32
      %32 = vector.broadcast %cst_24 : f32 to vector<16x1xf32>
      %33 = arith.mulf %31, %32 : vector<16x1xf32>
      %cst_25 = arith.constant 9.99999974E-6 : f32
      %34 = vector.broadcast %cst_25 : f32 to vector<16x1xf32>
      %35 = arith.addf %33, %34 : vector<16x1xf32>
      %36 = math.rsqrt %35 : vector<16x1xf32>
      %37 = vector.broadcast %36 : vector<16x1xf32> to vector<16x128xf32>
      %38 = arith.mulf %28, %37 : vector<16x128xf32>
      %c0_26 = arith.constant 0 : index
      %c0_27 = arith.constant 0 : index
      %39 = vector.load %arg8[%c0_26, %c0_27] : memref<1x128xf32, #tpu.memory_space<vmem>>, vector<1x128xf32>
      %40 = vector.broadcast %39 : vector<1x128xf32> to vector<16x128xf32>
      %41 = arith.mulf %38, %40 : vector<16x128xf32>
      %c0_28 = arith.constant 0 : index
      %c0_29 = arith.constant 0 : index
      %42 = vector.load %arg10[%c0_28, %c0_29] : memref<1x128xf32, #tpu.memory_space<vmem>>, vector<1x128xf32>
      %43 = vector.broadcast %42 : vector<1x128xf32> to vector<16x128xf32>
      %44 = arith.addf %41, %43 : vector<16x128xf32>
      %c0_30 = arith.constant 0 : index
      %c0_31 = arith.constant 0 : index
      %45 = vector.load %arg11[%c0_30, %c0_31] : memref<16x128xf32, #tpu.memory_space<vmem>>, vector<16x128xf32>
      tpu.vector_store %arg11[%c0_30, %c0_31], %44 {strides = array<i32>} : memref<16x128xf32, #tpu.memory_space<vmem>>, vector<16x128xf32>,
    } else {
    }
    return
  }
  func.func @transform_0(%arg0: i32, %arg1: i32) -> (i32, i32) {
    %c0_i32 = arith.constant 0 : i32
    %c0_i32_0 = arith.constant 0 : i32
    return %arg0, %c0_i32 : i32, i32
  }
  func.func @transform_1(%arg0: i32, %arg1: i32) -> (i32, i32) {
    %c0_i32 = arith.constant 0 : i32
    %c0_i32_0 = arith.constant 0 : i32
    return %c0_i32, %arg1 : i32, i32
  }
  func.func @transform_2(%arg0: i32, %arg1: i32) -> (i32, i32) {
    %c0_i32 = arith.constant 0 : i32
    %c0_i32_0 = arith.constant 0 : i32
    return %c0_i32, %arg1 : i32, i32
  }
  func.func @transform_3(%arg0: i32, %arg1: i32) -> (i32, i32) {
    %c0_i32 = arith.constant 0 : i32
    %c0_i32_0 = arith.constant 0 : i32
    return %arg1, %c0_i32 : i32, i32
  }
  func.func @transform_4(%arg0: i32, %arg1: i32) -> (i32, i32) {
    %c0_i32 = arith.constant 0 : i32
    %c0_i32_0 = arith.constant 0 : i32
    %c0_i32_1 = arith.constant 0 : i32
    return %c0_i32, %c0_i32_0 : i32, i32
  }
  func.func @transform_5(%arg0: i32, %arg1: i32) -> (i32, i32) {
    %c0_i32 = arith.constant 0 : i32
    %c0_i32_0 = arith.constant 0 : i32
    %c0_i32_1 = arith.constant 0 : i32
    return %c0_i32, %c0_i32_0 : i32, i32
  }
  func.func @transform_6(%arg0: i32, %arg1: i32) -> (i32, i32) {
    %c0_i32 = arith.constant 0 : i32
    %c0_i32_0 = arith.constant 0 : i32
    %c0_i32_1 = arith.constant 0 : i32
    return %c0_i32, %c0_i32_0 : i32, i32
  }
  func.func @transform_7(%arg0: i32, %arg1: i32) -> (i32, i32) {
    %c0_i32 = arith.constant 0 : i32
    %c0_i32_0 = arith.constant 0 : i32
    %c0_i32_1 = arith.constant 0 : i32
    return %c0_i32, %c0_i32_0 : i32, i32
  }
  func.func @transform_8(%arg0: i32, %arg1: i32) -> (i32, i32) {
    %c0_i32 = arith.constant 0 : i32
    %c0_i32_0 = arith.constant 0 : i32
    %c0_i32_1 = arith.constant 0 : i32
    return %c0_i32, %c0_i32_0 : i32, i32
  }
  func.func @transform_9(%arg0: i32, %arg1: i32) -> (i32, i32) {
    %c0_i32 = arith.constant 0 : i32
    %c0_i32_0 = arith.constant 0 : i32
    return %arg0, %c0_i32 : i32, i32
  }
}

</mosaic_0001>

<bundles_post_ra>
// kernel: tpu_custom_call.1
= control target key start
LH: loop header
LB: loop body
LE: loop exit
PB: predicated region body
PF: predicated region fallthrough
CT: control target
= control target key end

     0   :  { %14 = vsyncpa [#allocation5], 0  ;;  %s1142_s0 = inlined_call_operand.hbm [shape: f32[16,128], index: 0, kind: input, shape index: {}]   ;;  %s1143_s1 = inlined_call_operand.hbm [shape: f32[128,512], index: 1, kind: input, shape index: {}]   ;;  %s1144_s2 = inlined_call_operand.vmem [shape: f32[1,512], index: 2, kind: input, shape index: {}]   ;;  %s1145_s3 = inlined_call_operand.hbm [shape: f32[512,128], index: 3, kind: input, shape index: {}]   ;;  %s1146_s4 = inlined_call_operand.vmem [shape: f32[1,128], index: 4, kind: input, shape index: {}]   ;;  %s1147_s5 = inlined_call_operand.vmem [shape: f32[1,128], index: 5, kind: input, shape index: {}]   ;;  %s1148_s6 = inlined_call_operand.vmem [shape: f32[1,128], index: 6, kind: input, shape index: {}]   ;;  %s1149_s7 = inlined_call_operand.vmem [shape: f32[1,128], index: 7, kind: input, shape index: {}]   ;;  %s1150_s8 = inlined_call_operand.vmem [shape: f32[1,128], index: 8, kind: input, shape index: {}]   ;;  %s1151_s9 = inlined_call_operand.hbm [shape: f32[16,128], index: 9, kind: output, shape index: {}]  }
   0x1   :  { %15 = vsyncpa [#allocation8], 0 }
   0x2   :  { %16 = vsyncpa [#allocation6], 0  ;;  %s984_s30 = smov [#allocation7]   ;;  %s890_s13 = scalar_lea.hbm %s1143_s1, 8192 }
   0x3   :  { %s34_s10 = sshll.u32 %s984_s30, 4  ;;  %p891_p0 = scmp.ne.s32.totalorder %s1143_s1, %s890_s13  ;;  %s35_s10 = int_to_ptr.vmem [resolvable:$true] %s34_s10 }
   0x4   :  { %p894_p1 = scmp.lt.u32.totalorder %s890_s13, %s1143_s1 }
   0x6   :  { %p896_p2 = pnand %p894_p1, %p891_p0 }
   0x8   :  { %899 = shalt.err (!%p896_p2)
}
   0x9   :  { %s900_s18 = scalar_lea.vmem %s35_s10, 8192  ;;  %p905_p4 = scmp.lt.s32.totalorder %s35_s10, %s35_s10 }
   0xa   :  { %p901_p3 = scmp.ne.s32.totalorder %s35_s10, %s900_s18  ;;  %p906_p5 = scmp.lt.s32.totalorder %s900_s18, %s900_s18 }
   0xc   :  { %p907_p6 = por %p906_p5, %p905_p4 }
   0xe   :  { %p908_p7 = pnand %p907_p6, %p901_p3 }
  0x10   :  { %911 = shalt.err (!%p908_p7)
}
  0x11   :  { %s985_s19 = smov 512   ;;  %s986_s20 = smov 32  }
  0x12   :  { %40 = dma.hbm_to_vmem [thread:$0]  %s1143_s1, 8192, %s35_s10, [#allocation8], %s985_s19, %s985_s19, %s986_s20  }
  0x13   :  { %s987_s23 = smov [#allocation4]   ;;  %s912_s27 = scalar_lea.hbm %s1142_s0, 256 }
  0x14   :  { %s22_s24 = sshll.u32 %s987_s23, 4  ;;  %p913_p8 = scmp.ne.s32.totalorder %s1142_s0, %s912_s27  ;;  %s23_s24 = int_to_ptr.vmem [resolvable:$true] %s22_s24 }
  0x15   :  { %p916_p9 = scmp.lt.u32.totalorder %s912_s27, %s1142_s0 }
  0x17   :  { %p918_p10 = pnand %p916_p9, %p913_p8 }
  0x19   :  { %921 = shalt.err (!%p918_p10)
}
  0x1a   :  { %s922_s12 = scalar_lea.vmem %s23_s24, 256  ;;  %p927_p12 = scmp.lt.s32.totalorder %s23_s24, %s23_s24 }
  0x1b   :  { %p923_p11 = scmp.ne.s32.totalorder %s23_s24, %s922_s12  ;;  %p928_p13 = scmp.lt.s32.totalorder %s922_s12, %s922_s12 }
  0x1d   :  { %p929_p0 = por %p928_p13, %p927_p12 }
  0x1f   :  { %p930_p1 = pnand %p929_p0, %p923_p11 }
  0x21   :  { %933 = shalt.err (!%p930_p1)
}
  0x22   :  { %s988_s1 = smov 128   ;;  %s989_s10 = smov 8  }
  0x23   :  { %28 = dma.hbm_to_vmem [thread:$0]  %s1142_s0, 256, %s23_s24, [#allocation5], %s988_s1, %s988_s1, %s989_s10  }
  0x24   :  { %s990_s15 = smov [#allocation9]   ;;  %s934_s19 = scalar_lea.hbm %s1145_s3, 8192 }
  0x25   :  { %s48_s16 = sshll.u32 %s990_s15, 4  ;;  %p935_p2 = scmp.ne.s32.totalorder %s1145_s3, %s934_s19  ;;  %s49_s16 = int_to_ptr.vmem [resolvable:$true] %s48_s16 }
  0x26   :  { %p938_p3 = scmp.lt.u32.totalorder %s934_s19, %s1145_s3 }
  0x28   :  { %p940_p4 = pnand %p938_p3, %p935_p2 }
  0x2a   :  { %943 = shalt.err (!%p940_p4)
}
  0x2b   :  { %s944_s25 = scalar_lea.vmem %s49_s16, 8192  ;;  %p949_p6 = scmp.lt.s32.totalorder %s49_s16, %s49_s16 }
  0x2c   :  { %p945_p5 = scmp.ne.s32.totalorder %s49_s16, %s944_s25  ;;  %p950_p7 = scmp.lt.s32.totalorder %s944_s25, %s944_s25 }
  0x2e   :  { %p951_p8 = por %p950_p7, %p949_p6 }
  0x30   :  { %p952_p9 = pnand %p951_p8, %p945_p5 }
  0x32   :  { %955 = shalt.err (!%p952_p9)
}
  0x33   :  { %54 = dma.hbm_to_vmem [thread:$0]  %s1145_s3, 8192, %s49_s16, [#allocation8], %s988_s1, %s988_s1, %s989_s10  }
  0x34   :  { %978 = dma.done.wait [#allocation5], 256  }
  0x35   :  { %979 = vsyncadd [#allocation5], 4294967040 }
  0x36   :  { %980 = dma.done.wait [#allocation8], 16384  }
  0x37   :  { %981 = vsyncadd [#allocation8], 4294950912  ;;  %v78_v0 = vld [vmem:[#allocation4] sm:$0xff]  ;;  %v79_v1 = vld [vmem:[#allocation4 + $0x8] sm:$0xff]  ;;  %s992_s13 = smov [#allocation10]  }
  0x38   :  { %80 = vadd.xlane.f32.xlu0 %v78_v0  ;;  %v127_v2 = vld [vmem:[#allocation7 + $0x8] sm:$0xff]  ;;  %v129_v4 = vld [vmem:[#allocation7 + $0x18] sm:$0xff]  ;;  %v126_v7 = vld [vmem:[#allocation7] sm:$0xff]  ;;  %s651_s14 = sshll.u32 %s992_s13, 4  ;;  %s652_s14 = int_to_ptr.vmem [resolvable:$true] %s651_s14 }
  0x39   :  { %v131_v3 = vld [vmem:[#allocation7 + $0x28] sm:$0xff]  ;;  %v133_v6 = vld [vmem:[#allocation7 + $0x38] sm:$0xff]  ;;  %v130_v8 = vld [vmem:[#allocation7 + $0x20] sm:$0xff]  ;;  %s956_s15 = scalar_lea.vmem %s652_s14, 256  ;;  %p961_p11 = scmp.lt.s32.totalorder %s652_s14, %s652_s14 }
  0x3a   :  { %v745_v5 = vpack.c.bf16 %v131_v3, %v127_v2  ;;  %v777_v9 = vpack.c.bf16 %v133_v6, %v129_v4  ;;  %v747_v10 = vpack.c.bf16 %v130_v8, %v126_v7  ;;  %v128_v11 = vld [vmem:[#allocation7 + $0x10] sm:$0xff]  ;;  %v135_v13 = vld [vmem:[#allocation7 + $0x48] sm:$0xff]  ;;  %v137_v16 = vld [vmem:[#allocation7 + $0x58] sm:$0xff]  ;;  %p957_p10 = scmp.ne.s32.totalorder %s652_s14, %s956_s15  ;;  %p962_p12 = scmp.lt.s32.totalorder %s956_s15, %s956_s15 }
  0x3b   :  { %v132_v12 = vld [vmem:[#allocation7 + $0x30] sm:$0xff]  ;;  %v139_v15 = vld [vmem:[#allocation7 + $0x68] sm:$0xff]  ;;  %v141_v17 = vld [vmem:[#allocation7 + $0x78] sm:$0xff] }
  0x3c   :  { %82 = vadd.xlane.f32.xlu0 %v79_v1  ;;  %746 = vmatprep.subr.bf16.mxu0 %v745_v5  ;;  %v779_v14 = vpack.c.bf16 %v132_v12, %v128_v11  ;;  %v749_v18 = vpack.c.bf16 %v139_v15, %v135_v13  ;;  %v781_v19 = vpack.c.bf16 %v141_v17, %v137_v16  ;;  %v134_v20 = vld [vmem:[#allocation7 + $0x40] sm:$0xff]  ;;  %v136_v22 = vld [vmem:[#allocation7 + $0x50] sm:$0xff]  ;;  %v143_v25 = vld [vmem:[#allocation7 + $0x88] sm:$0xff]  ;;  %p963_p13 = por %p962_p12, %p961_p11 }
  0x3d   :  { %778 = vmatprep.subr.bf16.mxu1 %v777_v9  ;;  %748 = vmatpush1.bf16.msra.mxu0 %v747_v10  ;;  %v138_v21 = vld [vmem:[#allocation7 + $0x60] sm:$0xff]  ;;  %v140_v24 = vld [vmem:[#allocation7 + $0x70] sm:$0xff]  ;;  %v147_v26 = vld [vmem:[#allocation7 + $0xa8] sm:$0xff] }
  0x3e   :  { %780 = vmatpush1.bf16.msra.mxu1 %v779_v14  ;;  %v751_v23 = vpack.c.bf16 %v138_v21, %v134_v20  ;;  %750 = vmatprep.subr.bf16.mxu0 %v749_v18  ;;  %v783_v27 = vpack.c.bf16 %v140_v24, %v136_v22  ;;  %v753_v28 = vpack.c.bf16 %v147_v26, %v143_v25  ;;  %v145_v29 = vld [vmem:[#allocation7 + $0x98] sm:$0xff]  ;;  %v142_v31 = vld [vmem:[#allocation7 + $0x80] sm:$0xff]  ;;  %v144_v34 = vld [vmem:[#allocation7 + $0x90] sm:$0xff]  ;;  %v991_v22 = vmov 0.0   ;;  %p964_p0 = pnand %p963_p13, %p957_p10 }
  0x3f   :  { %782 = vmatprep.subr.bf16.mxu1 %v781_v19  ;;  %v149_v30 = vld [vmem:[#allocation7 + $0xb8] sm:$0xff]  ;;  %v146_v33 = vld [vmem:[#allocation7 + $0xa0] sm:$0xff]  ;;  %v148_v35 = vld [vmem:[#allocation7 + $0xb0] sm:$0xff]  ;;  %276 = vmatprep.mubr.f32.mxu0 %v991_v22 }
  0x40   :  { %v785_v32 = vpack.c.bf16 %v149_v30, %v145_v29  ;;  %v755_v36 = vpack.c.bf16 %v146_v33, %v142_v31  ;;  %v787_v37 = vpack.c.bf16 %v148_v35, %v144_v34  ;;  %v151_v46 = vld [vmem:[#allocation7 + $0xc8] sm:$0xff]  ;;  %v153_v48 = vld [vmem:[#allocation7 + $0xd8] sm:$0xff]  ;;  %v150_v51 = vld [vmem:[#allocation7 + $0xc0] sm:$0xff]  ;;  %353 = vmatprep.mubr.f32.mxu1 %v991_v22 }
  0x41   :  { %752 = vmatpush1.bf16.msra.mxu0 %v751_v23  ;;  %v155_v47 = vld [vmem:[#allocation7 + $0xe8] sm:$0xff]  ;;  %v157_v50 = vld [vmem:[#allocation7 + $0xf8] sm:$0xff]  ;;  %v154_v52 = vld [vmem:[#allocation7 + $0xe0] sm:$0xff] }
  0x42   :  { %784 = vmatpush1.bf16.msra.mxu1 %v783_v27  ;;  %754 = vmatprep.subr.bf16.mxu0 %v753_v28  ;;  %v757_v49 = vpack.c.bf16 %v155_v47, %v151_v46  ;;  %v789_v53 = vpack.c.bf16 %v157_v50, %v153_v48  ;;  %v759_v54 = vpack.c.bf16 %v154_v52, %v150_v51  ;;  %v152_v55 = vld [vmem:[#allocation7 + $0xd0] sm:$0xff]  ;;  %v159_v58 = vld [vmem:[#allocation7 + $0x108] sm:$0xff]  ;;  %v161_v60 = vld [vmem:[#allocation7 + $0x118] sm:$0xff] }
  0x43   :  { %786 = vmatprep.subr.bf16.mxu1 %v785_v32  ;;  %v156_v56 = vld [vmem:[#allocation7 + $0xf0] sm:$0xff]  ;;  %v163_v59 = vld [vmem:[#allocation7 + $0x128] sm:$0xff]  ;;  %v165_v62 = vld [vmem:[#allocation7 + $0x138] sm:$0xff] }
  0x44   :  { %v791_v57 = vpack.c.bf16 %v156_v56, %v152_v55  ;;  %v761_v61 = vpack.c.bf16 %v163_v59, %v159_v58  ;;  %v158_v63 = vld [vmem:[#allocation7 + $0x100] sm:$0xff]  ;;  %v160_v3 = vld [vmem:[#allocation7 + $0x110] sm:$0xff]  ;;  %v167_v6 = vld [vmem:[#allocation7 + $0x148] sm:$0xff] }
  0x45   :  { %756 = vmatpush1.bf16.msra.mxu0 %v755_v36  ;;  %v164_v4 = vld [vmem:[#allocation7 + $0x130] sm:$0xff]  ;;  %v171_v7 = vld [vmem:[#allocation7 + $0x168] sm:$0xff]  ;;  %v169_v8 = vld [vmem:[#allocation7 + $0x158] sm:$0xff] }
  0x46   :  { %788 = vmatpush1.bf16.msra.mxu1 %v787_v37  ;;  %758 = vmatprep.subr.bf16.mxu0 %v757_v49  ;;  %v795_v5 = vpack.c.bf16 %v164_v4, %v160_v3  ;;  %v765_v9 = vpack.c.bf16 %v171_v7, %v167_v6  ;;  %v173_v10 = vld [vmem:[#allocation7 + $0x178] sm:$0xff]  ;;  %v166_v11 = vld [vmem:[#allocation7 + $0x140] sm:$0xff]  ;;  %v168_v15 = vld [vmem:[#allocation7 + $0x150] sm:$0xff] }
  0x47   :  { %790 = vmatprep.subr.bf16.mxu1 %v789_v53  ;;  %v170_v12 = vld [vmem:[#allocation7 + $0x160] sm:$0xff]  ;;  %v797_v13 = vpack.c.bf16 %v173_v10, %v169_v8  ;;  %v172_v16 = vld [vmem:[#allocation7 + $0x170] sm:$0xff]  ;;  %v175_v17 = vld [vmem:[#allocation7 + $0x188] sm:$0xff] }
  0x48   :  { %v767_v14 = vpack.c.bf16 %v170_v12, %v166_v11  ;;  %v799_v18 = vpack.c.bf16 %v172_v16, %v168_v15  ;;  %v179_v19 = vld [vmem:[#allocation7 + $0x1a8] sm:$0xff]  ;;  %v177_v20 = vld [vmem:[#allocation7 + $0x198] sm:$0xff]  ;;  %v174_v25 = vld [vmem:[#allocation7 + $0x180] sm:$0xff] }
  0x49   :  { %760 = vmatpush1.bf16.msra.mxu0 %v759_v54  ;;  %v181_v21 = vld [vmem:[#allocation7 + $0x1b8] sm:$0xff]  ;;  %v769_v23 = vpack.c.bf16 %v179_v19, %v175_v17  ;;  %v178_v26 = vld [vmem:[#allocation7 + $0x1a0] sm:$0xff]  ;;  %v176_v27 = vld [vmem:[#allocation7 + $0x190] sm:$0xff] }
  0x4a   :  { %792 = vmatpush1.bf16.msra.mxu1 %v791_v57  ;;  %762 = vmatprep.subr.bf16.mxu0 %v761_v61  ;;  %v801_v24 = vpack.c.bf16 %v181_v21, %v177_v20  ;;  %v771_v28 = vpack.c.bf16 %v178_v26, %v174_v25  ;;  %v180_v29 = vld [vmem:[#allocation7 + $0x1b0] sm:$0xff]  ;;  %v183_v30 = vld [vmem:[#allocation7 + $0x1c8] sm:$0xff]  ;;  %v185_v34 = vld [vmem:[#allocation7 + $0x1d8] sm:$0xff] }
  0x4b   :  { %v187_v31 = vld [vmem:[#allocation7 + $0x1e8] sm:$0xff]  ;;  %v803_v32 = vpack.c.bf16 %v180_v29, %v176_v27  ;;  %v189_v35 = vld [vmem:[#allocation7 + $0x1f8] sm:$0xff]  ;;  %v182_v36 = vld [vmem:[#allocation7 + $0x1c0] sm:$0xff] }
  0x4c   :  { %v773_v33 = vpack.c.bf16 %v187_v31, %v183_v30  ;;  %v805_v37 = vpack.c.bf16 %v189_v35, %v185_v34  ;;  %v385_v46 = vld [vmem:[#allocation9 + $0x88] sm:$0xff]  ;;  %v416_v47 = vld [vmem:[#allocation9 + $0x180] sm:$0xff]  ;;  %v664_v58 = vld [vmem:[%s1147_s5] ss:$0 sm:$0xff] }
  0x4d   :  { %v417_v49 = vld [vmem:[#allocation9 + $0x188] sm:$0xff]  ;;  %v368_v61 = vld [vmem:[#allocation9] sm:$0xff]  ;;  %v387_v3 = vld [vmem:[#allocation9 + $0x98] sm:$0xff] }
  0x4e   :  { %v841_v50 = vpack.c.bf16 %v417_v49, %v416_v47  ;;  %v418_v4 = vld [vmem:[#allocation9 + $0x190] sm:$0xff]  ;;  %v371_v11 = vld [vmem:[#allocation9 + $0x18] sm:$0xff]  ;;  %v388_v16 = vld [vmem:[#allocation9 + $0xa0] sm:$0xff] }
  0x4f   :  { %v370_v10 = vld [vmem:[#allocation9 + $0x10] sm:$0xff]  ;;  %v403_v15 = vld [vmem:[#allocation9 + $0x118] sm:$0xff]  ;;  %v420_v19 = vld [vmem:[#allocation9 + $0x1a0] sm:$0xff] }
  0x50   :  { %v421_v20 = vld [vmem:[#allocation9 + $0x1a8] sm:$0xff]  ;;  %v815_v21 = vpack.c.bf16 %v371_v11, %v370_v10  ;;  %v390_v30 = vld [vmem:[#allocation9 + $0xb0] sm:$0xff]  ;;  %v376_v49 = vld [vmem:[#allocation9 + $0x40] sm:$0xff] }
  0x51   :  { %v373_v25 = vld [vmem:[#allocation9 + $0x28] sm:$0xff]  ;;  %v849_v27 = vpack.c.bf16 %v421_v20, %v420_v19  ;;  %v422_v31 = vld [vmem:[#allocation9 + $0x1b0] sm:$0xff] }
  0x52   :  { %v405_v29 = vld [vmem:[#allocation9 + $0x128] sm:$0xff]  ;;  %v374_v35 = vld [vmem:[#allocation9 + $0x30] sm:$0xff] }
  0x53   :  { %v430_v19 = vld [vmem:[#allocation9 + $0x1f0] sm:$0xff] }
  0xc5   :  { %v81_v38 = vpop.xlane.xlu0 %80 }
  0xc6   :  { %v84_v39 = vmul.f32 0.0078125, %v81_v38  ;;  %v186_v38 = vld [vmem:[#allocation7 + $0x1e0] sm:$0xff] }
  0xc8   :  { %v1085_v40 = vsub.f32 %v78_v0, %v84_v39  ;;  %v162_v0 = vld [vmem:[#allocation7 + $0x120] sm:$0xff]  ;;  %v184_v39 = vld [vmem:[#allocation7 + $0x1d0] sm:$0xff] }
  0xc9   :  { %v83_v41 = vpop.xlane.xlu0 %82  ;;  %v763_v2 = vpack.c.bf16 %v162_v0, %v158_v63  ;;  %v400_v63 = vld [vmem:[#allocation9 + $0x100] sm:$0xff]  ;;  %v401_v0 = vld [vmem:[#allocation9 + $0x108] sm:$0xff] }
  0xca   :  { %v85_v42 = vmul.f32 0.0078125, %v83_v41  ;;  %v88_v43 = vmul.f32 %v1085_v40, %v1085_v40  ;;  %v188_v41 = vld [vmem:[#allocation7 + $0x1f0] sm:$0xff] }
  0xcb   :  { %764 = vmatpush1.bf16.msra.mxu0 %v763_v2 }
  0xcc   :  { %v1089_v44 = vsub.f32 %v79_v1, %v85_v42  ;;  %90 = vadd.xlane.f32.xlu1 %v88_v43  ;;  %v793_v1 = vpack.c.bf16 %v165_v62, %v161_v60  ;;  %766 = vmatprep.subr.bf16.mxu0 %v765_v9  ;;  %v775_v42 = vpack.c.bf16 %v186_v38, %v182_v36  ;;  %v665_v60 = vld [vmem:[%s1149_s7] ss:$0 sm:$0xff]  ;;  %v369_v62 = vld [vmem:[#allocation9 + $0x8] sm:$0xff]  ;;  %v375_v36 = vld [vmem:[#allocation9 + $0x38] sm:$0xff] }
  0xcd   :  { %v807_v43 = vpack.c.bf16 %v188_v41, %v184_v39  ;;  %v811_v9 = vpack.c.bf16 %v369_v62, %v368_v61  ;;  %v406_v39 = vld [vmem:[#allocation9 + $0x130] sm:$0xff]  ;;  %v407_v41 = vld [vmem:[#allocation9 + $0x138] sm:$0xff]  ;;  %v823_v47 = vpack.c.bf16 %v375_v36, %v374_v35 }
  0xce   :  { %v89_v45 = vmul.f32 %v1089_v44, %v1089_v44  ;;  %794 = vmatprep.subr.bf16.mxu1 %v793_v1  ;;  %v386_v1 = vld [vmem:[#allocation9 + $0x90] sm:$0xff]  ;;  %v379_v62 = vld [vmem:[#allocation9 + $0x58] sm:$0xff] }
  0xcf   :  { %796 = vmatpush1.bf16.msra.mxu1 %v795_v5  ;;  %768 = vmatpush1.bf16.msra.mxu0 %v767_v14  ;;  %v419_v5 = vld [vmem:[#allocation9 + $0x198] sm:$0xff]  ;;  %v813_v12 = vpack.c.bf16 %v387_v3, %v386_v1  ;;  %v402_v14 = vld [vmem:[#allocation9 + $0x110] sm:$0xff]  ;;  %v396_v3 = vld [vmem:[#allocation9 + $0xe0] sm:$0xff] }
  0xd0   :  { %92 = vadd.xlane.f32.xlu1 %v89_v45  ;;  %798 = vmatprep.subr.bf16.mxu1 %v797_v13  ;;  %v384_v45 = vld [vmem:[#allocation9 + $0x80] sm:$0xff]  ;;  %v845_v13 = vpack.c.bf16 %v419_v5, %v418_v4  ;;  %v378_v61 = vld [vmem:[#allocation9 + $0x50] sm:$0xff]  ;;  %v397_v4 = vld [vmem:[#allocation9 + $0xe8] sm:$0xff] }
  0xd1   :  { %770 = vmatprep.subr.bf16.mxu0 %v769_v23  ;;  %v809_v48 = vpack.c.bf16 %v385_v46, %v384_v45  ;;  %v847_v23 = vpack.c.bf16 %v403_v15, %v402_v14  ;;  %v424_v45 = vld [vmem:[#allocation9 + $0x1c0] sm:$0xff]  ;;  %v425_v46 = vld [vmem:[#allocation9 + $0x1c8] sm:$0xff]  ;;  %v410_v1 = vld [vmem:[#allocation9 + $0x150] sm:$0xff]  ;;  %v833_v10 = vpack.c.bf16 %v397_v4, %v396_v3 }
  0xd2   :  { %v428_v5 = vld [vmem:[#allocation9 + $0x1e0] sm:$0xff]  ;;  %v413_v14 = vld [vmem:[#allocation9 + $0x168] sm:$0xff] }
  0xd3   :  { %800 = vmatpush1.bf16.msra.mxu1 %v799_v18  ;;  %772 = vmatpush1.bf16.msra.mxu0 %v771_v28  ;;  %v389_v18 = vld [vmem:[#allocation9 + $0xa8] sm:$0xff]  ;;  %v404_v28 = vld [vmem:[#allocation9 + $0x120] sm:$0xff] }
  0xd4   :  { %802 = vmatprep.subr.bf16.mxu1 %v801_v24  ;;  %774 = vmatprep.subr.bf16.mxu0 %v773_v33  ;;  %v372_v24 = vld [vmem:[#allocation9 + $0x20] sm:$0xff]  ;;  %v817_v26 = vpack.c.bf16 %v389_v18, %v388_v16  ;;  %v851_v34 = vpack.c.bf16 %v405_v29, %v404_v28  ;;  %v399_v18 = vld [vmem:[#allocation9 + $0xf8] sm:$0xff] }
  0xd5   :  { %v819_v33 = vpack.c.bf16 %v373_v25, %v372_v24  ;;  %v383_v24 = vld [vmem:[#allocation9 + $0x78] sm:$0xff] }
  0xd6   :  { %v415_v28 = vld [vmem:[#allocation9 + $0x178] sm:$0xff] }
  0xd7   :  { %804 = vmatpush1.bf16.msra.mxu1 %v803_v32  ;;  %776 = vmatpush1.bf16.msra.mxu0 %v775_v42  ;;  %v423_v32 = vld [vmem:[#allocation9 + $0x1b8] sm:$0xff]  ;;  %v392_v42 = vld [vmem:[#allocation9 + $0xc0] sm:$0xff] }
  0xd8   :  { %806 = vmatprep.subr.bf16.mxu1 %v805_v37  ;;  %810 = vmatprep.subr.bf16.mxu0 %v809_v48  ;;  %v853_v38 = vpack.c.bf16 %v423_v32, %v422_v31  ;;  %v855_v48 = vpack.c.bf16 %v407_v41, %v406_v39 }
  0xdb   :  { %808 = vmatpush1.bf16.msra.mxu1 %v807_v43  ;;  %v393_v43 = vld [vmem:[#allocation9 + $0xc8] sm:$0xff] }
  0xdc   :  { %842 = vmatprep.subr.bf16.mxu1 %v841_v50  ;;  %v377_v50 = vld [vmem:[#allocation9 + $0x48] sm:$0xff] }
 0x159   :  { %v91_v51 = vpop.xlane.xlu1 %90 }
 0x15a   :  { %v94_v52 = vmul.f32 0.0078125, %v91_v51  ;;  %v825_v51 = vpack.c.bf16 %v393_v43, %v392_v42 }
 0x15c   :  { %v96_v53 = vadd.f32 1e-05, %v94_v52  ;;  %v857_v52 = vpack.c.bf16 %v425_v46, %v424_v45 }
 0x15d   :  { %v93_v54 = vpop.xlane.xlu1 %92 }
 0x15e   :  { %882 = vrsqrt.f32 %v96_v53  ;;  %v95_v55 = vmul.f32 0.0078125, %v93_v54  ;;  %v408_v53 = vld [vmem:[#allocation9 + $0x140] sm:$0xff]  ;;  %v409_v54 = vld [vmem:[#allocation9 + $0x148] sm:$0xff] }
 0x160   :  { %v97_v56 = vadd.f32 1e-05, %v95_v55  ;;  %v394_v55 = vld [vmem:[#allocation9 + $0xd0] sm:$0xff] }
 0x162   :  { %884 = vrsqrt.f32 %v97_v56  ;;  %v395_v56 = vld [vmem:[#allocation9 + $0xd8] sm:$0xff] }
 0x168   :  { %v883_v57 = vpop.eup %882 }
 0x169   :  { %v100_v59 = vmul.f32 %v883_v57, %v1085_v40  ;;  %v843_v40 = vpack.c.bf16 %v401_v0, %v400_v63  ;;  %v426_v57 = vld [vmem:[#allocation9 + $0x1d0] sm:$0xff]  ;;  %v829_v63 = vpack.c.bf16 %v395_v56, %v394_v55 }
 0x16b   :  { %v109_v2 = vmul.f32 %v664_v58, %v100_v59  ;;  %v827_v59 = vpack.c.bf16 %v377_v50, %v376_v49 }
 0x16c   :  { %v885_v6 = vpop.eup %884 }
 0x16d   :  { %v1102_v7 = vadd.f32 %v665_v60, %v109_v2  ;;  %v101_v8 = vmul.f32 %v885_v6, %v1089_v44  ;;  %v411_v2 = vld [vmem:[#allocation9 + $0x158] sm:$0xff]  ;;  %v429_v6 = vld [vmem:[#allocation9 + $0x1e8] sm:$0xff] }
 0x16e   :  { %v865_v11 = vpack.c.bf16 %v429_v6, %v428_v5 }
 0x16f   :  { %277 = vmatmul.mubr.f32.vlgmr.msra.gmra.mrb[0].mxu0 %v1102_v7  ;;  %354 = vmatmul.mubr.f32.vlgmr.msra.gmra.mrb[0].mxu1 %v1102_v7  ;;  %v110_v17 = vmul.f32 %v664_v58, %v101_v8  ;;  %v427_v58 = vld [vmem:[#allocation9 + $0x1d8] sm:$0xff]  ;;  %v831_v8 = vpack.c.bf16 %v379_v62, %v378_v61 }
 0x170   :  { %282 = vmatprep.mubr.f32.mxu0 %v991_v22  ;;  %359 = vmatprep.mubr.f32.mxu1 %v991_v22  ;;  %v391_v22 = vld [vmem:[#allocation9 + $0xb8] sm:$0xff]  ;;  %v861_v0 = vpack.c.bf16 %v427_v58, %v426_v57 }
 0x171   :  { %v1109_v44 = vadd.f32 %v665_v60, %v110_v17  ;;  %812 = vmatpush3.bf16.msra.mxu0 %v811_v9  ;;  %844 = vmatpush3.bf16.msra.mxu1 %v843_v40  ;;  %v821_v37 = vpack.c.bf16 %v391_v22, %v390_v30  ;;  %v859_v60 = vpack.c.bf16 %v409_v54, %v408_v53  ;;  %v380_v40 = vld [vmem:[#allocation9 + $0x60] sm:$0xff]  ;;  %v398_v17 = vld [vmem:[#allocation9 + $0xf0] sm:$0xff]  ;;  %v192_v30 = vlaneseq }
 0x172   :  { %814 = vmatprep.subr.bf16.mxu0 %v813_v12  ;;  %846 = vmatprep.subr.bf16.mxu1 %v845_v13  ;;  %v863_v9 = vpack.c.bf16 %v411_v2, %v410_v1  ;;  %v381_v12 = vld [vmem:[#allocation9 + $0x68] sm:$0xff]  ;;  %v412_v13 = vld [vmem:[#allocation9 + $0x160] sm:$0xff]  ;;  %v837_v20 = vpack.c.bf16 %v399_v18, %v398_v17 }
 0x173   :  { %283 = vmatmul.mubr.f32.gmra.mrb[2].mxu0 %v1109_v44  ;;  %360 = vmatmul.mubr.f32.gmra.mrb[2].mxu1 %v1109_v44  ;;  %v835_v15 = vpack.c.bf16 %v381_v12, %v380_v40  ;;  %v867_v16 = vpack.c.bf16 %v413_v14, %v412_v13  ;;  %v193_v22 = vshrl.u32 %v192_v30, 7 }
 0x175   :  { %816 = vmatpush3.bf16.msra.mxu0 %v815_v21  ;;  %848 = vmatpush3.bf16.msra.mxu1 %v847_v23  ;;  %v431_v21 = vld [vmem:[#allocation9 + $0x1f8] sm:$0xff]  ;;  %v382_v23 = vld [vmem:[#allocation9 + $0x70] sm:$0xff]  ;;  %v198_v31 = vsub.s32 1, %v193_v22  ;;  %v206_v32 = vsub.s32 3, %v193_v22  ;;  %v202_v35 = vsub.s32 2, %v193_v22 }
 0x176   :  { %818 = vmatprep.subr.bf16.mxu0 %v817_v26  ;;  %850 = vmatprep.subr.bf16.mxu1 %v849_v27  ;;  %v869_v25 = vpack.c.bf16 %v431_v21, %v430_v19  ;;  %v839_v26 = vpack.c.bf16 %v383_v24, %v382_v23  ;;  %v414_v27 = vld [vmem:[#allocation9 + $0x170] sm:$0xff] }
 0x177   :  { %v871_v29 = vpack.c.bf16 %v415_v28, %v414_v27  ;;  %v667_v27 = vld [vmem:[%s1148_s6] ss:$0 sm:$0xff] }
 0x179   :  { %820 = vmatpush3.bf16.msra.mxu0 %v819_v33  ;;  %852 = vmatpush3.bf16.msra.mxu1 %v851_v34  ;;  %v190_v33 = vld [vmem:[%s1144_s2] sm:$0xf]  ;;  %v194_v34 = vsub.s32 0, %v193_v22 }
 0x17a   :  { %822 = vmatprep.subr.bf16.mxu0 %v821_v37  ;;  %854 = vmatprep.subr.bf16.mxu1 %v853_v38  ;;  %v199_v36 = vrot.slane %v190_v33, %v198_v31  ;;  %v207_v37 = vrot.slane %v190_v33, %v206_v32  ;;  %v203_v39 = vrot.slane %v190_v33, %v202_v35 }
 0x17b   :  { %v195_v38 = vrot.slane %v190_v33, %v194_v34 }
 0x17d   :  { %824 = vmatpush3.bf16.msra.mxu0 %v823_v47  ;;  %856 = vmatpush3.bf16.msra.mxu1 %v855_v48 }
 0x17e   :  { %826 = vmatprep.subr.bf16.mxu0 %v825_v51  ;;  %858 = vmatprep.subr.bf16.mxu1 %v857_v52 }
 0x181   :  { %828 = vmatpush3.bf16.msra.mxu0 %v827_v59  ;;  %860 = vmatpush3.bf16.msra.mxu1 %v859_v60 }
 0x182   :  { %830 = vmatprep.subr.bf16.mxu0 %v829_v63  ;;  %862 = vmatprep.subr.bf16.mxu1 %v861_v0  ;;  %v666_v0 = vld [vmem:[%s1146_s4] ss:$0 sm:$0xff] }
 0x185   :  { %832 = vmatpush3.bf16.msra.mxu0 %v831_v8  ;;  %864 = vmatpush3.bf16.msra.mxu1 %v863_v9 }
 0x186   :  { %834 = vmatprep.subr.bf16.mxu0 %v833_v10  ;;  %866 = vmatprep.subr.bf16.mxu1 %v865_v11 }
 0x189   :  { %836 = vmatpush3.bf16.msra.mxu0 %v835_v15  ;;  %868 = vmatpush3.bf16.msra.mxu1 %v867_v16 }
 0x18a   :  { %838 = vmatprep.subr.bf16.mxu0 %v837_v20  ;;  %870 = vmatprep.subr.bf16.mxu1 %v869_v25 }
 0x18d   :  { %840 = vmatpush3.bf16.msra.mxu0 %v839_v26  ;;  %872 = vmatpush3.bf16.msra.mxu1 %v871_v29  ;;  %v668_v29 = vld [vmem:[%s1150_s8] ss:$0 sm:$0xff] }
 0x242   :  { %v278_v41 = vpop.f32.mrb[0].mxu0  ;;  %v355_v42 = vpop.f32.mrb[0].mxu1 }
 0x243   :  { %v280_v43 = vpop.f32.mrb[1].mxu0  ;;  %v357_v45 = vpop.f32.mrb[1].mxu1  ;;  %v279_v48 = vadd.f32 %v278_v41, %v195_v38  ;;  %v356_v49 = vadd.f32 %v355_v42, %v203_v39 }
 0x244   :  { %v281_v46 = vadd.f32 %v280_v43, %v199_v36  ;;  %v358_v47 = vadd.f32 %v357_v45, %v207_v37 }
 0x246   :  { %v284_v50 = vpop.f32.mrb[2].mxu0  ;;  %v361_v51 = vpop.f32.mrb[2].mxu1  ;;  %496 = vmatprep.mubr.f32.mxu0 %v281_v46  ;;  %571 = vmatprep.mubr.f32.mxu1 %v358_v47 }
 0x247   :  { %v286_v52 = vpop.f32.mrb[3].mxu0  ;;  %v363_v53 = vpop.f32.mrb[3].mxu1  ;;  %497 = vmatmul.mubr.f32.vlgmr.msra.gmra.mrb[4].mxu0 %v279_v48  ;;  %572 = vmatmul.mubr.f32.vlgmr.msra.gmra.mrb[4].mxu1 %v356_v49  ;;  %v285_v56 = vadd.f32 %v284_v50, %v195_v38  ;;  %v362_v57 = vadd.f32 %v361_v51, %v203_v39 }
 0x248   :  { %v287_v54 = vadd.f32 %v286_v52, %v199_v36  ;;  %v364_v55 = vadd.f32 %v363_v53, %v207_v37 }
 0x24a   :  { %501 = vmatprep.mubr.f32.mxu0 %v287_v54  ;;  %576 = vmatprep.mubr.f32.mxu1 %v364_v55 }
 0x24b   :  { %502 = vmatmul.mubr.f32.gmra.mrb[6].mxu0 %v285_v56  ;;  %577 = vmatmul.mubr.f32.gmra.mrb[6].mxu1 %v362_v57 }
 0x31a   :  { %v701_v58 = vpop.f32.mrb[4].mxu0  ;;  %v739_v59 = vpop.f32.mrb[4].mxu1 }
 0x31b   :  { %v702_v60 = vpop.f32.mrb[5].mxu0  ;;  %v740_v61 = vpop.f32.mrb[5].mxu1 }
 0x31c   :  { %v703_v62 = vadd.f32 %v702_v60, %v701_v58  ;;  %v741_v63 = vadd.f32 %v740_v61, %v739_v59 }
 0x31e   :  { %v574_v1 = vadd.f32 %v741_v63, %v703_v62  ;;  %v704_v2 = vpop.f32.mrb[6].mxu0  ;;  %v742_v3 = vpop.f32.mrb[6].mxu1 }
 0x31f   :  { %v705_v4 = vpop.f32.mrb[7].mxu0  ;;  %v743_v5 = vpop.f32.mrb[7].mxu1 }
 0x320   :  { %v706_v6 = vadd.f32 %v705_v4, %v704_v2  ;;  %v744_v8 = vadd.f32 %v743_v5, %v742_v3  ;;  %v598_v9 = vadd.f32 %v666_v0, %v574_v1 }
 0x322   :  { %v579_v40 = vadd.f32 %v744_v8, %v706_v6  ;;  %v602_v10 = vadd.f32 %v598_v9, %v1102_v7 }
 0x324   :  { %604 = vadd.xlane.f32.xlu0 %v602_v10  ;;  %v599_v11 = vadd.f32 %v666_v0, %v579_v40 }
 0x326   :  { %v603_v12 = vadd.f32 %v599_v11, %v1109_v44 }
 0x328   :  { %606 = vadd.xlane.f32.xlu1 %v603_v12 }
 0x3b1   :  { %v605_v13 = vpop.xlane.xlu0 %604 }
 0x3b2   :  { %v608_v14 = vmul.f32 0.0078125, %v605_v13 }
 0x3b4   :  { %v610_v15 = vsub.f32 %v602_v10, %v608_v14 }
 0x3b5   :  { %v607_v16 = vpop.xlane.xlu1 %606 }
 0x3b6   :  { %v609_v17 = vmul.f32 0.0078125, %v607_v16  ;;  %v612_v18 = vmul.f32 %v610_v15, %v610_v15 }
 0x3b8   :  { %v611_v19 = vsub.f32 %v603_v12, %v609_v17  ;;  %614 = vadd.xlane.f32.xlu0 %v612_v18 }
 0x3ba   :  { %v613_v20 = vmul.f32 %v611_v19, %v611_v19 }
 0x3bc   :  { %616 = vadd.xlane.f32.xlu1 %v613_v20 }
 0x445   :  { %v615_v21 = vpop.xlane.xlu0 %614 }
 0x446   :  { %v618_v23 = vmul.f32 0.0078125, %v615_v21 }
 0x448   :  { %v620_v24 = vadd.f32 1e-05, %v618_v23 }
 0x449   :  { %v617_v25 = vpop.xlane.xlu1 %616 }
 0x44a   :  { %886 = vrsqrt.f32 %v620_v24  ;;  %v619_v7 = vmul.f32 0.0078125, %v617_v25 }
 0x44c   :  { %v621_v26 = vadd.f32 1e-05, %v619_v7 }
 0x44e   :  { %888 = vrsqrt.f32 %v621_v26 }
 0x454   :  { %v887_v44 = vpop.eup %886 }
 0x455   :  { %v624_v28 = vmul.f32 %v887_v44, %v610_v15 }
 0x457   :  { %v633_v30 = vmul.f32 %v667_v27, %v624_v28 }
 0x458   :  { %v889_v22 = vpop.eup %888 }
 0x459   :  { %v625_v31 = vmul.f32 %v889_v22, %v611_v19  ;;  %v642_v32 = vadd.f32 %v668_v29, %v633_v30 }
 0x45b   :  { %v634_v33 = vmul.f32 %v667_v27, %v625_v31  ;;  %644 = vst [vmem:[#allocation10] sm:$0xff] %v642_v32 }
 0x45d   :  { %v643_v34 = vadd.f32 %v668_v29, %v634_v33 }
 0x45f   :  { %645 = vst [vmem:[#allocation10 + $0x8] sm:$0xff] %v643_v34 }
 0x460   :  { %967 = shalt.err (!%p964_p0)
}
 0x461   :  { %s968_s16 = scalar_lea.hbm %s1151_s9, 256 }
 0x462   :  { %p969_p1 = scmp.ne.s32.totalorder %s1151_s9, %s968_s16  ;;  %p972_p2 = scmp.lt.u32.totalorder %s968_s16, %s1151_s9 }
 0x464   :  { %p974_p3 = pnand %p972_p2, %p969_p1 }
 0x466   :  { %977 = shalt.err (!%p974_p3)
}
 0x467   :  { %657 = dma.vmem_to_hbm [thread:$0]  %s652_s14, 256, %s1151_s9, [#allocation6], %s988_s1, %s988_s1, %s989_s10  }
 0x468   :  { %982 = dma.done.wait [#allocation6], 256  }
 0x469   :  { %983 = vsyncadd [#allocation6], 4294967040 }
 0x46a   :  { %661 = vsyncpa [#allocation5], 1 }
 0x46b   :  { %662 = vsyncpa [#allocation8], 1 }
 0x46c   :  { %663 = vsyncpa [#allocation6], 1 }

</bundles_post_ra>
